<compile_context>
chip_gen: v6e
topology: v6e:2x2x1
jax: 0.10.0
libtpu: 0.0.40
codegen_flags: <defaults>
</compile_context>

<pallas_src>
import functools

import jax
import jax.numpy as jnp
from jax.experimental import pallas as pl
from jax.experimental.pallas import tpu as pltpu

NEG_SLOPE = 0.2      # GATv2Conv leaky_relu negative slope (PyG default)
BN_EPS = 1e-5        # BatchNorm eps (PyG / torch default)
NEG_INF = -1e30


# --------------------------------------------------------------------------- #
# Kernels
# --------------------------------------------------------------------------- #
def _proj_kernel(x_ref, w_ref, b_ref, o_ref):
    # o = x @ w + b  (bf16 MXU inputs, f32 accumulate, f32 bias/output)
    o_ref[...] = (
        jnp.dot(x_ref[...], w_ref[...], preferred_element_type=jnp.float32)
        + b_ref[...]
    )


def _attn_init(m_sc, l_sc, acc_sc):
    m_sc[...] = jnp.full_like(m_sc, NEG_INF)
    l_sc[...] = jnp.zeros_like(l_sc)
    acc_sc[...] = jnp.zeros_like(acc_sc)


def _attn_online_step(xr_ref, xlt_ref, xlv_ref, att_ref, adj_ref,
                      m_sc, l_sc, acc_sc, *, channels):
    """One (tgt_tile, src_tile) step of the online masked softmax for one head."""
    adj_f = adj_ref[...].astype(jnp.float32)             # [Tt, Ts]  (0/1 mask)
    xr = xr_ref[...]                                      # [Tt, C]   f32 (targets)
    att = att_ref[...]                                    # [1, C]    f32

    # e[i, j] = sum_c att[c] * leaky_relu(xr[i, c] + xl[j, c])
    # built per-channel so every intermediate is a lane-dense [Tt, Ts] tile
    # (sources live on the lane axis through the transposed xl operand).
    e = jnp.zeros(adj_f.shape, jnp.float32)
    for c in range(channels):                             # small static unroll (C <= 8)
        z = xr[:, c:c + 1] + xlt_ref[c:c + 1, :]          # [Tt,1] + [1,Ts] -> [Tt,Ts]
        z = jnp.where(z >= 0.0, z, NEG_SLOPE * z)
        e = e + att[0:1, c:c + 1] * z
    e = jnp.where(adj_f > 0.0, e, NEG_INF)

    m_prev = m_sc[...]
    m_new = jnp.maximum(m_prev, jnp.max(e, axis=-1, keepdims=True))
    corr = jnp.exp(m_prev - m_new)
    # multiply by the 0/1 mask so a fully-masked tile contributes exactly zero
    p = jnp.exp(e - m_new) * adj_f
    l_sc[...] = corr * l_sc[...] + jnp.sum(p, axis=-1, keepdims=True)
    acc_sc[...] = corr * acc_sc[...] + jnp.dot(
        p.astype(jnp.bfloat16), xlv_ref[...], preferred_element_type=jnp.float32)
    m_sc[...] = m_new


def _gat1_attn_kernel(xr_ref, xlt_ref, xlv_ref, att_ref, adj_ref,
                      scale_ref, shift_ref, prelu_ref,
                      o_ref, m_sc, l_sc, acc_sc, *, channels):
    """GATv2 attention+aggregation fused with (concat bias + BatchNorm + PReLU)."""
    si = pl.program_id(2)

    @pl.when(si == 0)
    def _():
        _attn_init(m_sc, l_sc, acc_sc)

    _attn_online_step(xr_ref, xlt_ref, xlv_ref, att_ref, adj_ref,
                      m_sc, l_sc, acc_sc, channels=channels)

    @pl.when(si == pl.num_programs(2) - 1)
    def _():
        y = acc_sc[...] * pl.reciprocal(l_sc[...], approx=True)
        y = y * scale_ref[...] + shift_ref[...]           # folded bias + BatchNorm
        o_ref[...] = jnp.where(y >= 0.0, y, prelu_ref[...] * y)


def _gat2_attn_kernel(xr_ref, xlt_ref, xlv_ref, att_ref, adj_ref, bias_ref,
                      o_ref, lsm_ref, m_sc, l_sc, acc_sc, *, channels):
    """GATv2 attention+aggregation (single head) fused with bias + log_softmax."""
    si = pl.program_id(2)

    @pl.when(si == 0)
    def _():
        _attn_init(m_sc, l_sc, acc_sc)

    _attn_online_step(xr_ref, xlt_ref, xlv_ref, att_ref, adj_ref,
                      m_sc, l_sc, acc_sc, channels=channels)

    @pl.when(si == pl.num_programs(2) - 1)
    def _():
        y = acc_sc[...] * pl.reciprocal(l_sc[...], approx=True) + bias_ref[...]
        o_ref[...] = y
        m = jnp.max(y, axis=-1, keepdims=True)
        z = y - m
        lsm_ref[...] = z - jnp.log(jnp.sum(jnp.exp(z), axis=-1, keepdims=True))


# --------------------------------------------------------------------------- #
# Pallas wrappers
# --------------------------------------------------------------------------- #
def _row_tile(n, cap=256):
    if n <= cap:
        return n
    assert n % cap == 0, f"N={n} must be a multiple of {cap}"
    return cap


def _attn_tile(n, cap=128):
    if n <= cap:
        return n
    assert n % cap == 0, f"N={n} must be a multiple of {cap}"
    return cap


def _project(x, w, b):
    """out = x @ w + b, tiled over rows; bf16 MXU inputs, f32 accumulation."""
    n, fin = x.shape
    fout = w.shape[1]
    tn = _row_tile(n)
    return pl.pallas_call(
        _proj_kernel,
        out_shape=jax.ShapeDtypeStruct((n, fout), jnp.float32),
        grid=(n // tn,),
        in_specs=[pl.BlockSpec((tn, fin), lambda i: (i, 0)),
                  pl.BlockSpec((fin, fout), lambda i: (0, 0)),
                  pl.BlockSpec((1, fout), lambda i: (0, 0))],
        out_specs=pl.BlockSpec((tn, fout), lambda i: (i, 0)),
        compiler_params=pltpu.CompilerParams(dimension_semantics=("parallel",)),
    )(x.astype(jnp.bfloat16), w.astype(jnp.bfloat16), b)


def _gatv2_project_and_layout(x, p, heads, out_ch):
    """Fused (wl | wr) projection + the layout plumbing the attention kernel wants."""
    n = x.shape[0]
    hid = heads * out_ch
    wcat = jnp.concatenate([p["wl"], p["wr"]], axis=1)            # [Fin, 2*H*C]
    bcat = jnp.concatenate([p["bl"], p["br"]], axis=1)            # [1,   2*H*C]
    xlr = _project(x, wcat, bcat)                                 # [N, 2*H*C] f32
    xl, xr = xlr[:, :hid], xlr[:, hid:]
    xr_hnc = xr.reshape(n, heads, out_ch).transpose(1, 0, 2)                         # [H,N,C] f32
    xlv_hnc = xl.reshape(n, heads, out_ch).transpose(1, 0, 2).astype(jnp.bfloat16)   # [H,N,C] bf16
    xl_t = xl.T                                                                      # [H*C, N] f32
    att = p["att"].reshape(heads, 1, out_ch)                                         # [H,1,C] f32
    return xr_hnc, xl_t, xlv_hnc, att


def _attn_common(n, heads, out_ch):
    tt = _attn_tile(n)
    ts = tt
    grid = (heads, n // tt, n // ts)
    in_specs = [
        pl.BlockSpec((None, tt, out_ch), lambda h, i, s: (h, i, 0)),   # xr  (targets)  [Tt,C]
        pl.BlockSpec((out_ch, ts), lambda h, i, s: (h, s)),            # xl^T (sources) [C,Ts]
        pl.BlockSpec((None, ts, out_ch), lambda h, i, s: (h, s, 0)),   # xl  (sources, bf16) [Ts,C]
        pl.BlockSpec((None, 1, out_ch), lambda h, i, s: (h, 0, 0)),    # att [1,C]
        pl.BlockSpec((tt, ts), lambda h, i, s: (i, s)),                # adjacency tile [Tt,Ts]
    ]
    scratch = [pltpu.VMEM((tt, 1), jnp.float32),       # running max  m
               pltpu.VMEM((tt, 1), jnp.float32),       # running sum  l
               pltpu.VMEM((tt, out_ch), jnp.float32)]  # weighted accumulator
    cparams = pltpu.CompilerParams(
        dimension_semantics=("parallel", "parallel", "arbitrary"))
    return grid, in_specs, scratch, cparams, tt


def gat_forward(x, edge_index, params):
    n = x.shape[0]
    heads = params["heads1"]
    dim_h = params["dim_h"]
    dim_out = params["dim_out"]
    hid = heads * dim_h

    # dense adjacency mask with self-loops; bf16 halves DMA bytes vs f32
    src, dst = edge_index[0], edge_index[1]
    adj = jnp.zeros((n, n), jnp.float32).at[dst, src].set(1.0)
    idx = jnp.arange(n)
    adj = adj.at[idx, idx].set(1.0).astype(jnp.bfloat16)

    # ---- gat1 (heads=10, concat=True) fused with bn1 + prelu ----
    p1, bn = params["gat1"], params["bn1"]
    # fold BatchNorm (running stats) and the gat1 concat bias into a single affine
    bn_s = bn["gamma"] * jax.lax.rsqrt(bn["var"] + BN_EPS)            # [1, hid]
    bn_t = bn["beta"] - bn["mean"] * bn_s
    scale1 = bn_s.reshape(heads, 1, dim_h)
    shift1 = (p1["bias"] * bn_s + bn_t).reshape(heads, 1, dim_h)

    xr1, xl1_t, xl1_v, att1 = _gatv2_project_and_layout(x, p1, heads, dim_h)
    grid1, specs1, scratch1, cp1, tt1 = _attn_common(n, heads, dim_h)
    h1 = pl.pallas_call(
        functools.partial(_gat1_attn_kernel, channels=dim_h),
        out_shape=jax.ShapeDtypeStruct((heads, n, dim_h), jnp.float32),
        grid=grid1,
        in_specs=specs1 + [
            pl.BlockSpec((None, 1, dim_h), lambda h, i, s: (h, 0, 0)),  # scale
            pl.BlockSpec((None, 1, dim_h), lambda h, i, s: (h, 0, 0)),  # shift
            pl.BlockSpec((1, 1), lambda h, i, s: (0, 0)),               # prelu a
        ],
        out_specs=pl.BlockSpec((None, tt1, dim_h), lambda h, i, s: (h, i, 0)),
        scratch_shapes=scratch1,
        compiler_params=cp1,
    )(xr1, xl1_t, xl1_v, att1, adj, scale1, shift1, params["prelu_a"])
    h_cat = h1.transpose(1, 0, 2).reshape(n, hid)       # concat heads -> lane-dense [N, H*C]

    # ---- gat2 (heads=1, concat=False) fused with bias + log_softmax ----
    p2 = params["gat2"]
    xr2, xl2_t, xl2_v, att2 = _gatv2_project_and_layout(h_cat, p2, 1, dim_out)
    grid2, specs2, scratch2, cp2, tt2 = _attn_common(n, 1, dim_out)
    bias2 = p2["bias"].reshape(1, 1, dim_out)
    x_out, logp = pl.pallas_call(
        functools.partial(_gat2_attn_kernel, channels=dim_out),
        out_shape=(jax.ShapeDtypeStruct((1, n, dim_out), jnp.float32),
                   jax.ShapeDtypeStruct((1, n, dim_out), jnp.float32)),
        grid=grid2,
        in_specs=specs2 + [
            pl.BlockSpec((None, 1, dim_out), lambda h, i, s: (h, 0, 0)),  # bias
        ],
        out_specs=(pl.BlockSpec((None, tt2, dim_out), lambda h, i, s: (h, i, 0)),
                   pl.BlockSpec((None, tt2, dim_out), lambda h, i, s: (h, i, 0))),
        scratch_shapes=scratch2,
        compiler_params=cp2,
    )(xr2, xl2_t, xl2_v, att2, adj, bias2)
    return x_out[0], logp[0]


# --------------------------------------------------------------------------- #
# Deterministic parameter / input construction
# --------------------------------------------------------------------------- #
def init_params(key, dim_in, dim_h, dim_out, heads1):
    ks = jax.random.split(key, 8)
    hid = heads1 * dim_h

    def w(k, shape):
        return (0.1 * jax.random.normal(k, shape)).astype(jnp.float32)

    gat1 = {
        "wl": w(ks[0], (dim_in, hid)), "bl": jnp.zeros((1, hid), jnp.float32),
        "wr": w(ks[1], (dim_in, hid)), "br": jnp.zeros((1, hid), jnp.float32),
        "att": w(ks[2], (heads1, dim_h)),
        "bias": jnp.zeros((1, hid), jnp.float32),        # concat bias [10*dim_h]
    }
    gat2 = {
        "wl": w(ks[3], (hid, dim_out)), "bl": jnp.zeros((1, dim_out), jnp.float32),
        "wr": w(ks[4], (hid, dim_out)), "br": jnp.zeros((1, dim_out), jnp.float32),
        "att": w(ks[5], (1, dim_out)),
        "bias": jnp.zeros((1, dim_out), jnp.float32),    # concat=False bias [dim_out]
    }
    bn1 = {
        "gamma": jnp.ones((1, hid), jnp.float32),
        "beta": jnp.zeros((1, hid), jnp.float32),
        "mean": jnp.zeros((1, hid), jnp.float32),
        "var": jnp.ones((1, hid), jnp.float32),
    }
    return {
        "gat1": gat1, "gat2": gat2, "bn1": bn1,
        "prelu_a": jnp.full((1, 1), 0.25, jnp.float32),  # torch PReLU default
        "heads1": heads1, "dim_h": dim_h, "dim_out": dim_out,
    }


if __name__ == "__main__":
    N, DIM_IN, DIM_H, DIM_OUT, HEADS = 16, 8, 8, 4, 10

    key = jax.random.PRNGKey(0)
    k_x, k_p = jax.random.split(key)
    x = jax.random.normal(k_x, (N, DIM_IN), dtype=jnp.float32)

    # deterministic small graph: bidirectional ring + skip-3 edges
    ar = jnp.arange(N, dtype=jnp.int32)
    src = jnp.concatenate([ar, (ar + 1) % N, ar])
    dst = jnp.concatenate([(ar + 1) % N, ar, (ar + 3) % N])
    edge_index = jnp.stack([src, dst])               # [2, 48]

    params = init_params(k_p, DIM_IN, DIM_H, DIM_OUT, HEADS)

    x_out, logp = gat_forward(x, edge_index, params)
    jax.block_until_ready((x_out, logp))
    assert x_out.shape == (N, DIM_OUT) and logp.shape == (N, DIM_OUT)
    assert bool(jnp.all(jnp.isfinite(x_out))) and bool(jnp.all(jnp.isfinite(logp)))
    print("KERNEL_OK")
</pallas_src>

<mosaic_0001>
module attributes {stable_mosaic.version = 11 : i64} {
  func.func @_proj_kernel(%arg0: i32, %arg1: memref<16x8xbf16, #tpu.memory_space<vmem>>, %arg2: memref<8x160xbf16, #tpu.memory_space<vmem>>, %arg3: memref<1x160xf32, #tpu.memory_space<vmem>>, %arg4: memref<16x160xf32, #tpu.memory_space<vmem>>) attributes {dimension_semantics = [#tpu.dimension_semantics<parallel>], iteration_bounds = array<i64: 1>, scalar_prefetch = 0 : i64, scratch_operands = 0 : i64, tpu.core_type = #tpu.core_type<tc>, window_params = [{transform_indices = @transform_0, window_bounds = array<i64: 16, 8>}, {pipeline_mode = #tpu.pipeline_mode<synchronous>, transform_indices = @transform_1, window_bounds = array<i64: 8, 160>}, {pipeline_mode = #tpu.pipeline_mode<synchronous>, transform_indices = @transform_2, window_bounds = array<i64: 1, 160>}, {transform_indices = @transform_3, window_bounds = array<i64: 16, 160>}]} {
    %c0 = arith.constant 0 : index
    %c0_0 = arith.constant 0 : index
    %0 = vector.load %arg1[%c0, %c0_0] : memref<16x8xbf16, #tpu.memory_space<vmem>>, vector<16x8xbf16>
    %c0_1 = arith.constant 0 : index
    %c0_2 = arith.constant 0 : index
    %1 = vector.load %arg2[%c0_1, %c0_2] : memref<8x160xbf16, #tpu.memory_space<vmem>>, vector<8x160xbf16>
    %cst = arith.constant dense<0.000000e+00> : vector<16x160xf32>
    %2 = tpu.matmul %0, %1, %cst {dimension_numbers = #tpu.dot_dimension_numbers<[1], [0], [0], [1], [0, 0, 1, 1], [], []>} : vector<16x8xbf16>, vector<8x160xbf16>, vector<16x160xf32> -> vector<16x160xf32>
    %c0_3 = arith.constant 0 : index
    %c0_4 = arith.constant 0 : index
    %3 = vector.load %arg3[%c0_3, %c0_4] : memref<1x160xf32, #tpu.memory_space<vmem>>, vector<1x160xf32>
    %4 = vector.broadcast %3 : vector<1x160xf32> to vector<16x160xf32>
    %5 = arith.addf %2, %4 : vector<16x160xf32>
    %c0_5 = arith.constant 0 : index
    %c0_6 = arith.constant 0 : index
    %6 = vector.load %arg4[%c0_5, %c0_6] : memref<16x160xf32, #tpu.memory_space<vmem>>, vector<16x160xf32>
    tpu.vector_store %arg4[%c0_5, %c0_6], %5 {strides = array<i32>} : memref<16x160xf32, #tpu.memory_space<vmem>>, vector<16x160xf32>,
    return
  }
  func.func @transform_0(%arg0: i32) -> (i32, i32) {
    %c0_i32 = arith.constant 0 : i32
    %c0_i32_0 = arith.constant 0 : i32
    return %arg0, %c0_i32 : i32, i32
  }
  func.func @transform_1(%arg0: i32) -> (i32, i32) {
    %c0_i32 = arith.constant 0 : i32
    %c0_i32_0 = arith.constant 0 : i32
    %c0_i32_1 = arith.constant 0 : i32
    return %c0_i32, %c0_i32_0 : i32, i32
  }
  func.func @transform_2(%arg0: i32) -> (i32, i32) {
    %c0_i32 = arith.constant 0 : i32
    %c0_i32_0 = arith.constant 0 : i32
    %c0_i32_1 = arith.constant 0 : i32
    return %c0_i32, %c0_i32_0 : i32, i32
  }
  func.func @transform_3(%arg0: i32) -> (i32, i32) {
    %c0_i32 = arith.constant 0 : i32
    %c0_i32_0 = arith.constant 0 : i32
    return %arg0, %c0_i32 : i32, i32
  }
}

</mosaic_0001>

<bundles_post_ra>
// kernel: tpu_custom_call.1
= control target key start
LH: loop header
LB: loop body
LE: loop exit
PB: predicated region body
PF: predicated region fallthrough
CT: control target
= control target key end

     0   :  { %vm45_vm0 = vcmask 1043456   ;;  %v150_v3 = vmov 0   ;;  %s186_s0 = inlined_call_operand.vmem [shape: bf16[16,8], index: 0, kind: input, shape index: {}]   ;;  %s187_s1 = inlined_call_operand.vmem [shape: bf16[8,160], index: 1, kind: input, shape index: {}]   ;;  %s188_s2 = inlined_call_operand.vmem [shape: f32[1,160], index: 2, kind: input, shape index: {}]   ;;  %s189_s3 = inlined_call_operand.hbm [shape: f32[16,160], index: 3, kind: output, shape index: {}]  }
   0x1   :  { %v18_v0 = vld [vmem:[%s187_s1] sm:$0xff]  ;;  %84 = vmatprep.mubr.bf16.mxu0 %v150_v3 }
   0x2   :  { %v118_v1 = vcombine.high %v18_v0, %v18_v0  ;;  %v117_v2 = vcombine.low %v18_v0, %v18_v0 }
   0x3   :  { %8 = vsyncpa [#allocation3], 0  ;;  %v127_v5 = vld [vmem:[%s186_s0] sm:$0xff]   ;;  %vm41_vm1 = vcmask 64512   ;;  %v21_v6 = vlaneseq  ;;  %vm96_vm2 = vcmask 261120   ;;  %s151_s0 = smov [#allocation2]  }
   0x4   :  { %119 = vmatprep.subr.msk.bf16.mxu0 %vm45_vm0, %v118_v1  ;;  %v47_v4 = vsel %vm45_vm0, %v117_v2, 0  ;;  %v19_v9 = vld [vmem:[%s188_s2] sm:$0x3]  ;;  %s105_s17 = sshll.u32 %s151_s0, 4  ;;  %s106_s17 = int_to_ptr.vmem [resolvable:$true] %s105_s17 }
   0x5   :  { %67 = vmatpush1.bf16.msra.mxu0 %v47_v4  ;;  %v22_v7 = vshrl.u32 %v21_v6, 7  ;;  %s128_s2 = scalar_lea.vmem %s106_s17, 512  ;;  %p133_p1 = scmp.lt.s32.totalorder %s106_s17, %s106_s17 }
   0x6   :  { %p129_p0 = scmp.ne.s32.totalorder %s106_s17, %s128_s2  ;;  %p134_p2 = scmp.lt.s32.totalorder %s128_s2, %s128_s2 }
   0x7   :  { %v23_v8 = vsub.s32 0, %v22_v7  ;;  %v27_v10 = vsub.s32 1, %v22_v7 }
   0x8   :  { %120 = vmatmul.mubr.msk.bf16.vlgmr.msra.gmra.mxu0 %vm41_vm1, %v127_v5  ;;  %p135_p3 = por %p134_p2, %p133_p1 }
   0x9   :  { %v24_v11 = vrot.slane %v19_v9, %v23_v8  ;;  %v28_v12 = vrot.slane %v19_v9, %v27_v10 }
   0xa   :  { %p136_p4 = pnand %p135_p3, %p129_p0 }
  0xc8   :  { %v86_v13 = vpop.f32.mrf.mxu0 }
  0xc9   :  { %v87_v14 = vadd.f32 %v86_v13, %v24_v11 }
  0xca   :  { %v88_v15 = vpop.f32.mrf.mxu0 }
  0xcb   :  { %95 = vst [vmem:[#allocation2] sm:$0xff] %v87_v14  ;;  %v89_v16 = vadd.f32 %v88_v15, %v28_v12 }
  0xcc   :  { %v90_v17 = vpop.f32.mrf.mxu0 }
  0xcd   :  { %97 = vst.msk [vmem:[#allocation2 + $0x8] sm:$0xff] %vm96_vm2, %v89_v16  ;;  %v91_v18 = vadd.f32 %v90_v17, %v24_v11 }
  0xce   :  { %v92_v19 = vpop.f32.mrf.mxu0 }
  0xcf   :  { %98 = vst [vmem:[#allocation2 + $0x10] sm:$0xff] %v91_v18  ;;  %v93_v20 = vadd.f32 %v92_v19, %v28_v12 }
  0xd1   :  { %99 = vst.msk [vmem:[#allocation2 + $0x18] sm:$0xff] %vm96_vm2, %v93_v20 }
  0xd2   :  { %139 = shalt.err (!%p136_p4)
}
  0xd3   :  { %s152_s18 = smov 256   ;;  %s153_s19 = smov 16  }
  0xd4   :  { %111 = dma.vmem_to_hbm [thread:$0]  %s106_s17, 512, %s189_s3, [#allocation3], %s152_s18, %s152_s18, %s153_s19  }
  0xd5   :  { %148 = dma.done.wait [#allocation3], 512  }
  0xd6   :  { %149 = vsyncadd [#allocation3], 4294966784 }
  0xd7   :  { %115 = vsyncpa [#allocation3], 1 }

</bundles_post_ra>
